<compile_context>
chip_gen: v7x
topology: tpu7x:2x2x1
jax: 0.10.0
libtpu: 0.0.40
codegen_flags: <defaults>
</compile_context>

<pallas_src>
import jax
import jax.numpy as jnp
from jax import lax
from jax.experimental import pallas as pl
from jax.experimental.pallas import tpu as pltpu


def _round_up(n, m):
    return -(-n // m) * m


def mlp_kernel(x_ref,
               w1_ref, b1_ref,
               w2_ref, b2_ref,
               w3_ref, b3_ref,
               w4_ref, b4_ref,
               o_ref):
    x = x_ref[...]                                     # (bt, 6)

    # fc1 + relu: (48, 6) x (bt, 6), contract the shared feature dim -> (48, bt)
    h = lax.dot_general(w1_ref[...], x,
                        dimension_numbers=(((1,), (1,)), ((), ())),
                        preferred_element_type=jnp.float32)
    h = jnp.maximum(h + b1_ref[...], 0.0)

    # fc2 + relu: (48, 48) @ (48, bt) -> (48, bt)
    h = lax.dot_general(w2_ref[...], h,
                        dimension_numbers=(((1,), (0,)), ((), ())),
                        preferred_element_type=jnp.float32)
    h = jnp.maximum(h + b2_ref[...], 0.0)

    # fc3 + relu: (24, 48) @ (48, bt) -> (24, bt)
    h = lax.dot_general(w3_ref[...], h,
                        dimension_numbers=(((1,), (0,)), ((), ())),
                        preferred_element_type=jnp.float32)
    h = jnp.maximum(h + b3_ref[...], 0.0)

    # fc4: (1, 24) @ (24, bt) -> (1, bt)  — lane-dense output row
    y = lax.dot_general(w4_ref[...], h,
                        dimension_numbers=(((1,), (0,)), ((), ())),
                        preferred_element_type=jnp.float32)
    o_ref[...] = (y + b4_ref[...]).astype(o_ref.dtype)


def _pad2d(a, rows, cols):
    r, c = a.shape
    return jnp.pad(a, ((0, rows - r), (0, cols - c)))


def _prepare_params(params):
    """One-time pad of torch-layout params to sublane-friendly shapes."""
    (w1, b1), (w2, b2), (w3, b3), (w4, b4) = params
    w1p = _pad2d(w1, 48, 6)                  # (45, 6)  -> (48, 6)
    w2p = _pad2d(w2, 48, 48)                 # (45, 45) -> (48, 48)
    w3p = _pad2d(w3, 24, 48)                 # (20, 45) -> (24, 48)
    w4p = _pad2d(w4, 1, 24)                  # (1, 20)  -> (1, 24)
    b1p = _pad2d(b1.reshape(-1, 1), 48, 1)   # (48, 1)
    b2p = _pad2d(b2.reshape(-1, 1), 48, 1)   # (48, 1)
    b3p = _pad2d(b3.reshape(-1, 1), 24, 1)   # (24, 1)
    b4p = b4.reshape(1, 1)                   # (1, 1)
    return (w1p, b1p, w2p, b2p, w3p, b3p, w4p, b4p)


def net_forward(x, params, *, batch_tile=None):
    """Pallas forward of the 6->45->45->20->1 MLP (ReLU on the first 3 layers).

    `params` are in torch layout: weights (out, in), biases (out,).
    """
    B, Fin = x.shape
    assert Fin == 6
    w1, b1, w2, b2, w3, b3, w4, b4 = _prepare_params(params)

    if batch_tile is None:
        b128 = _round_up(B, 128)
        # >= 2 grid steps so both v7x TensorCores get work; cap tiles at 2048
        # lanes. Tiles must be multiples of 128 for unmasked lane-dense stores.
        n_steps = max(2, -(-b128 // 2048))
        batch_tile = max(128, _round_up(-(-b128 // n_steps), 128))
    assert batch_tile % 128 == 0, "batch_tile must be a multiple of 128"

    Bp = _round_up(B, batch_tile)
    num_tiles = Bp // batch_tile
    if Bp != B:
        # Pad is at most one tile; padded rows are independent and sliced off.
        x = jnp.pad(x, ((0, Bp - B), (0, 0)))

    def resident(arr):
        # Constant block index -> Pallas keeps this block VMEM-resident
        # across the whole grid (only ~14 KB of weights/biases total).
        return pl.BlockSpec(arr.shape, lambda i: (0, 0))

    in_specs = [
        pl.BlockSpec((batch_tile, Fin), lambda i: (i, 0)),   # x tile
        resident(w1), resident(b1),
        resident(w2), resident(b2),
        resident(w3), resident(b3),
        resident(w4), resident(b4),
    ]
    # Single (1, Bp) lane-dense output row; each grid step writes one unmasked
    # (1, batch_tile) slab at lane offset i*batch_tile.
    out_specs = pl.BlockSpec((1, batch_tile), lambda i: (0, i))

    out = pl.pallas_call(
        mlp_kernel,
        out_shape=jax.ShapeDtypeStruct((1, Bp), jnp.float32),
        grid_spec=pltpu.PrefetchScalarGridSpec(
            num_scalar_prefetch=0,
            grid=(num_tiles,),
            in_specs=in_specs,
            out_specs=out_specs,
        ),
        compiler_params=pltpu.CompilerParams(
            dimension_semantics=("parallel",)),
    )(x, w1, b1, w2, b2, w3, b3, w4, b4)

    # Row-major (1, Bp) -> (Bp, 1) reshape is free; slice off batch padding.
    return out.reshape(Bp, 1)[:B]


def init_params(key):
    """Deterministic init matching nn.Linear: weight (out, in), bias (out,)."""
    sizes = [(6, 45), (45, 45), (45, 20), (20, 1)]
    params = []
    for fan_in, fan_out in sizes:
        key, kw, kb = jax.random.split(key, 3)
        bound = 1.0 / jnp.sqrt(fan_in)
        w = jax.random.uniform(kw, (fan_out, fan_in), jnp.float32, -bound, bound)
        b = jax.random.uniform(kb, (fan_out,), jnp.float32, -bound, bound)
        params.append((w, b))
    return params


def net_forward_ref(x, params):
    """Plain-JAX reference of the PyTorch forward (torch-layout params)."""
    (w1, b1), (w2, b2), (w3, b3), (w4, b4) = params
    h = jnp.maximum(x @ w1.T + b1, 0.0)
    h = jnp.maximum(h @ w2.T + b2, 0.0)
    h = jnp.maximum(h @ w3.T + b3, 0.0)
    return h @ w4.T + b4


if __name__ == "__main__":
    key = jax.random.PRNGKey(0)
    kx, kp = jax.random.split(key)
    params = init_params(kp)

    batch = 16
    x = jax.random.normal(kx, (batch, 6), jnp.float32)

    out = net_forward(x, params)
    out = jax.block_until_ready(out)

    ref = net_forward_ref(x, params)
    assert out.shape == (batch, 1)
    assert jnp.allclose(out, ref, atol=1e-4, rtol=1e-4), "mismatch vs reference"
    print("KERNEL_OK")
</pallas_src>

<mosaic_0001>
module attributes {stable_mosaic.version = 11 : i64} {
  func.func @mlp_kernel(%arg0: i32, %arg1: memref<128x6xf32, #tpu.memory_space<vmem>>, %arg2: memref<48x6xf32, #tpu.memory_space<vmem>>, %arg3: memref<48x1xf32, #tpu.memory_space<vmem>>, %arg4: memref<48x48xf32, #tpu.memory_space<vmem>>, %arg5: memref<48x1xf32, #tpu.memory_space<vmem>>, %arg6: memref<24x48xf32, #tpu.memory_space<vmem>>, %arg7: memref<24x1xf32, #tpu.memory_space<vmem>>, %arg8: memref<1x24xf32, #tpu.memory_space<vmem>>, %arg9: memref<1x1xf32, #tpu.memory_space<vmem>>, %arg10: memref<1x128xf32, #tpu.memory_space<vmem>>) attributes {dimension_semantics = [#tpu.dimension_semantics<parallel>], iteration_bounds = array<i64: 1>, scalar_prefetch = 0 : i64, scratch_operands = 0 : i64, tpu.core_type = #tpu.core_type<tc>, window_params = [{transform_indices = @transform_0, window_bounds = array<i64: 128, 6>}, {pipeline_mode = #tpu.pipeline_mode<synchronous>, transform_indices = @transform_1, window_bounds = array<i64: 48, 6>}, {pipeline_mode = #tpu.pipeline_mode<synchronous>, transform_indices = @transform_2, window_bounds = array<i64: 48, 1>}, {pipeline_mode = #tpu.pipeline_mode<synchronous>, transform_indices = @transform_3, window_bounds = array<i64: 48, 48>}, {pipeline_mode = #tpu.pipeline_mode<synchronous>, transform_indices = @transform_4, window_bounds = array<i64: 48, 1>}, {pipeline_mode = #tpu.pipeline_mode<synchronous>, transform_indices = @transform_5, window_bounds = array<i64: 24, 48>}, {pipeline_mode = #tpu.pipeline_mode<synchronous>, transform_indices = @transform_6, window_bounds = array<i64: 24, 1>}, {pipeline_mode = #tpu.pipeline_mode<synchronous>, transform_indices = @transform_7, window_bounds = array<i64: 1, 24>}, {pipeline_mode = #tpu.pipeline_mode<synchronous>, transform_indices = @transform_8, window_bounds = array<i64: 1, 1>}, {transform_indices = @transform_9, window_bounds = array<i64: 1, 128>}]} {
    %c0 = arith.constant 0 : index
    %c0_0 = arith.constant 0 : index
    %0 = vector.load %arg1[%c0, %c0_0] : memref<128x6xf32, #tpu.memory_space<vmem>>, vector<128x6xf32>
    %c0_1 = arith.constant 0 : index
    %c0_2 = arith.constant 0 : index
    %1 = vector.load %arg2[%c0_1, %c0_2] : memref<48x6xf32, #tpu.memory_space<vmem>>, vector<48x6xf32>
    %cst = arith.constant dense<0.000000e+00> : vector<48x128xf32>
    %2 = tpu.matmul %1, %0, %cst {dimension_numbers = #tpu.dot_dimension_numbers<[1], [1], [0], [0], [0, 0, 1, 0], [], []>} : vector<48x6xf32>, vector<128x6xf32>, vector<48x128xf32> -> vector<48x128xf32>
    %c0_3 = arith.constant 0 : index
    %c0_4 = arith.constant 0 : index
    %3 = vector.load %arg3[%c0_3, %c0_4] : memref<48x1xf32, #tpu.memory_space<vmem>>, vector<48x1xf32>
    %4 = vector.broadcast %3 : vector<48x1xf32> to vector<48x128xf32>
    %5 = arith.addf %2, %4 : vector<48x128xf32>
    %cst_5 = arith.constant 0.000000e+00 : f32
    %6 = vector.broadcast %cst_5 : f32 to vector<48x128xf32>
    %7 = arith.maximumf %5, %6 : vector<48x128xf32>
    %c0_6 = arith.constant 0 : index
    %c0_7 = arith.constant 0 : index
    %8 = vector.load %arg4[%c0_6, %c0_7] : memref<48x48xf32, #tpu.memory_space<vmem>>, vector<48x48xf32>
    %cst_8 = arith.constant dense<0.000000e+00> : vector<48x128xf32>
    %9 = tpu.matmul %8, %7, %cst_8 {dimension_numbers = #tpu.dot_dimension_numbers<[1], [0], [0], [1], [0, 0, 1, 1], [], []>} : vector<48x48xf32>, vector<48x128xf32>, vector<48x128xf32> -> vector<48x128xf32>
    %c0_9 = arith.constant 0 : index
    %c0_10 = arith.constant 0 : index
    %10 = vector.load %arg5[%c0_9, %c0_10] : memref<48x1xf32, #tpu.memory_space<vmem>>, vector<48x1xf32>
    %11 = vector.broadcast %10 : vector<48x1xf32> to vector<48x128xf32>
    %12 = arith.addf %9, %11 : vector<48x128xf32>
    %cst_11 = arith.constant 0.000000e+00 : f32
    %13 = vector.broadcast %cst_11 : f32 to vector<48x128xf32>
    %14 = arith.maximumf %12, %13 : vector<48x128xf32>
    %c0_12 = arith.constant 0 : index
    %c0_13 = arith.constant 0 : index
    %15 = vector.load %arg6[%c0_12, %c0_13] : memref<24x48xf32, #tpu.memory_space<vmem>>, vector<24x48xf32>
    %cst_14 = arith.constant dense<0.000000e+00> : vector<24x128xf32>
    %16 = tpu.matmul %15, %14, %cst_14 {dimension_numbers = #tpu.dot_dimension_numbers<[1], [0], [0], [1], [0, 0, 1, 1], [], []>} : vector<24x48xf32>, vector<48x128xf32>, vector<24x128xf32> -> vector<24x128xf32>
    %c0_15 = arith.constant 0 : index
    %c0_16 = arith.constant 0 : index
    %17 = vector.load %arg7[%c0_15, %c0_16] : memref<24x1xf32, #tpu.memory_space<vmem>>, vector<24x1xf32>
    %18 = vector.broadcast %17 : vector<24x1xf32> to vector<24x128xf32>
    %19 = arith.addf %16, %18 : vector<24x128xf32>
    %cst_17 = arith.constant 0.000000e+00 : f32
    %20 = vector.broadcast %cst_17 : f32 to vector<24x128xf32>
    %21 = arith.maximumf %19, %20 : vector<24x128xf32>
    %c0_18 = arith.constant 0 : index
    %c0_19 = arith.constant 0 : index
    %22 = vector.load %arg8[%c0_18, %c0_19] : memref<1x24xf32, #tpu.memory_space<vmem>>, vector<1x24xf32>
    %cst_20 = arith.constant dense<0.000000e+00> : vector<1x128xf32>
    %23 = tpu.matmul %22, %21, %cst_20 {dimension_numbers = #tpu.dot_dimension_numbers<[1], [0], [0], [1], [0, 0, 1, 1], [], []>} : vector<1x24xf32>, vector<24x128xf32>, vector<1x128xf32> -> vector<1x128xf32>
    %c0_21 = arith.constant 0 : index
    %c0_22 = arith.constant 0 : index
    %24 = vector.load %arg9[%c0_21, %c0_22] : memref<1x1xf32, #tpu.memory_space<vmem>>, vector<1x1xf32>
    %25 = vector.broadcast %24 : vector<1x1xf32> to vector<1x128xf32>
    %26 = arith.addf %23, %25 : vector<1x128xf32>
    %c0_23 = arith.constant 0 : index
    %c0_24 = arith.constant 0 : index
    %27 = vector.load %arg10[%c0_23, %c0_24] : memref<1x128xf32, #tpu.memory_space<vmem>>, vector<1x128xf32>
    tpu.vector_store %arg10[%c0_23, %c0_24], %26 {strides = array<i32>} : memref<1x128xf32, #tpu.memory_space<vmem>>, vector<1x128xf32>,
    return
  }
  func.func @transform_0(%arg0: i32) -> (i32, i32) {
    %c0_i32 = arith.constant 0 : i32
    %c0_i32_0 = arith.constant 0 : i32
    return %arg0, %c0_i32 : i32, i32
  }
  func.func @transform_1(%arg0: i32) -> (i32, i32) {
    %c0_i32 = arith.constant 0 : i32
    %c0_i32_0 = arith.constant 0 : i32
    %c0_i32_1 = arith.constant 0 : i32
    return %c0_i32, %c0_i32_0 : i32, i32
  }
  func.func @transform_2(%arg0: i32) -> (i32, i32) {
    %c0_i32 = arith.constant 0 : i32
    %c0_i32_0 = arith.constant 0 : i32
    %c0_i32_1 = arith.constant 0 : i32
    return %c0_i32, %c0_i32_0 : i32, i32
  }
  func.func @transform_3(%arg0: i32) -> (i32, i32) {
    %c0_i32 = arith.constant 0 : i32
    %c0_i32_0 = arith.constant 0 : i32
    %c0_i32_1 = arith.constant 0 : i32
    return %c0_i32, %c0_i32_0 : i32, i32
  }
  func.func @transform_4(%arg0: i32) -> (i32, i32) {
    %c0_i32 = arith.constant 0 : i32
    %c0_i32_0 = arith.constant 0 : i32
    %c0_i32_1 = arith.constant 0 : i32
    return %c0_i32, %c0_i32_0 : i32, i32
  }
  func.func @transform_5(%arg0: i32) -> (i32, i32) {
    %c0_i32 = arith.constant 0 : i32
    %c0_i32_0 = arith.constant 0 : i32
    %c0_i32_1 = arith.constant 0 : i32
    return %c0_i32, %c0_i32_0 : i32, i32
  }
  func.func @transform_6(%arg0: i32) -> (i32, i32) {
    %c0_i32 = arith.constant 0 : i32
    %c0_i32_0 = arith.constant 0 : i32
    %c0_i32_1 = arith.constant 0 : i32
    return %c0_i32, %c0_i32_0 : i32, i32
  }
  func.func @transform_7(%arg0: i32) -> (i32, i32) {
    %c0_i32 = arith.constant 0 : i32
    %c0_i32_0 = arith.constant 0 : i32
    %c0_i32_1 = arith.constant 0 : i32
    return %c0_i32, %c0_i32_0 : i32, i32
  }
  func.func @transform_8(%arg0: i32) -> (i32, i32) {
    %c0_i32 = arith.constant 0 : i32
    %c0_i32_0 = arith.constant 0 : i32
    %c0_i32_1 = arith.constant 0 : i32
    return %c0_i32, %c0_i32_0 : i32, i32
  }
  func.func @transform_9(%arg0: i32) -> (i32, i32) {
    %c0_i32 = arith.constant 0 : i32
    %c0_i32_0 = arith.constant 0 : i32
    return %c0_i32, %arg0 : i32, i32
  }
}

</mosaic_0001>

<bundles_post_ra>
// kernel: tpu_custom_call.1
= control target key start
LH: loop header
LB: loop body
LE: loop exit
PB: predicated region body
PF: predicated region fallthrough
CT: control target
= control target key end

     0   :  { %s1178_s0 = inlined_call_operand.vmem [shape: f32[128,6], index: 0, kind: input, shape index: {}]   ;;  %s1179_s1 = inlined_call_operand.vmem [shape: f32[48,6], index: 1, kind: input, shape index: {}]   ;;  %s1180_s2 = inlined_call_operand.vmem [shape: f32[48,1], index: 2, kind: input, shape index: {}]   ;;  %s1181_s3 = inlined_call_operand.vmem [shape: f32[48,48], index: 3, kind: input, shape index: {}]   ;;  %s1182_s4 = inlined_call_operand.vmem [shape: f32[48,1], index: 4, kind: input, shape index: {}]   ;;  %s1183_s5 = inlined_call_operand.vmem [shape: f32[24,48], index: 5, kind: input, shape index: {}]   ;;  %s1184_s6 = inlined_call_operand.vmem [shape: f32[24,1], index: 6, kind: input, shape index: {}]   ;;  %s1185_s7 = inlined_call_operand.vmem [shape: f32[1,24], index: 7, kind: input, shape index: {}]   ;;  %s1186_s8 = inlined_call_operand.<no memory space> [shape: f32[1,1], index: 8, kind: input, shape index: {}]   ;;  %s1187_s9 = inlined_call_operand.hbm [shape: f32[1,128], index: 9, kind: output, shape index: {}]  }
   0x1   :  { %v14_v0 = vstv %s1186_s8 }
   0x2   :  { %15 = vst [vmem:[#allocation2] sm:$0x1] %v14_v0 }
   0x3   :  { %v35_v1 = vld [vmem:[%s1178_s0] sm:$0xff]  ;;  %v36_v2 = vld [vmem:[%s1178_s0 + $0x8] sm:$0xff]  ;;  %vm93_vm0 = vcmask 48128   ;;  %v37_v3 = vld [vmem:[%s1178_s0 + $0x10] sm:$0xff]  ;;  %v910_v7 = vmov 0  }
   0x4   :  { %v807_v4 = vpack.c.bf16 %v36_v2, %v35_v1  ;;  %vm979_vm1 = vmpackc.low %vm93_vm0, %vm93_vm0  ;;  %v38_v6 = vld [vmem:[%s1178_s0 + $0x18] sm:$0xff]  ;;  %884 = vset.pattern.permute.xlu0 %v910_v7  ;;  %885 = vset.pattern.permute.xlu1 %v910_v7  ;;  %v51_v9 = vld [vmem:[%s1179_s1] sm:$0xff] }
   0x5   :  { %v813_v8 = vpack.c.bf16 %v38_v6, %v37_v3  ;;  %v39_v10 = vld [vmem:[%s1178_s0 + $0x20] sm:$0xff]  ;;  %v40_v11 = vld [vmem:[%s1178_s0 + $0x28] sm:$0xff]  ;;  %747 = vmatprep.mubr.msk.f32.mxu0 %vm93_vm0, %v51_v9  ;;  %v59_v13 = vld [vmem:[%s1180_s2 + $0x10] sm:$0xff] }
   0x6   :  { %809 = vmatprep.subr.msk.bf16.mxu0 %vm979_vm1, %v807_v4  ;;  %v57_v12 = vld [vmem:[%s1180_s2] sm:$0xff]  ;;  %v819_v14 = vpack.c.bf16 %v40_v11, %v39_v10  ;;  %75 = vperm.xlu1 %885, %v59_v13   ;;  %v58_v15 = vld [vmem:[%s1180_s2 + $0x8] sm:$0xff]  ;;  %v60_v16 = vld [vmem:[%s1180_s2 + $0x18] sm:$0xff] }
   0x7   :  { %812 = vmatpush3.bf16.xpose.msk.msra.mxu0 %vm979_vm1, %v807_v4  ;;  %65 = vperm.xlu0 %884, %v57_v12   ;;  %v61_v17 = vld [vmem:[%s1180_s2 + $0x20] sm:$0xff] }
   0x8   :  { %815 = vmatprep.subr.msk.bf16.mxu0 %vm979_vm1, %v813_v8 }
   0xa   :  { %80 = vperm.xlu1 %885, %v60_v16  }
   0xb   :  { %70 = vperm.xlu0 %884, %v58_v15  }
   0xf   :  { %818 = vmatpush3.bf16.xpose.msk.msra.mxu0 %vm979_vm1, %v813_v8 }
  0x10   :  { %821 = vmatprep.subr.msk.bf16.mxu0 %vm979_vm1, %v819_v14 }
  0x11   :  { %16 = vsyncpa [#allocation4], 0  ;;  %v41_v18 = vld [vmem:[%s1178_s0 + $0x30] sm:$0xff]  ;;  %v42_v19 = vld [vmem:[%s1178_s0 + $0x38] sm:$0xff]  ;;  %85 = vperm.xlu0 %884, %v61_v17   ;;  %vm303_vm2 = vcmask 392192   ;;  %vm912_vm3 = vmmov 0  }
  0x12   :  { %v62_v20 = vld [vmem:[%s1180_s2 + $0x28] sm:$0xff]  ;;  %v825_v21 = vpack.c.bf16 %v42_v19, %v41_v18  ;;  %v267_v22 = vld [vmem:[%s1182_s4] sm:$0xff]  ;;  %v269_v24 = vld [vmem:[%s1182_s4 + $0x10] sm:$0xff]  ;;  %v911_v18 = vmov 0.0|0.0   ;;  %v913_v19 = vmov 0.0   ;;  %vm547_vm4 = vcmask 195584  }
  0x13   :  { %90 = vperm.xlu1 %885, %v62_v20   ;;  %v268_v23 = vld [vmem:[%s1182_s4 + $0x8] sm:$0xff]  ;;  %v43_v25 = vld [vmem:[%s1178_s0 + $0x40] sm:$0xff]  ;;  %v270_v27 = vld [vmem:[%s1182_s4 + $0x18] sm:$0xff]  ;;  %s914_s27 = smov [#allocation3]  }
  0x14   :  { %v44_v26 = vld [vmem:[%s1178_s0 + $0x48] sm:$0xff]  ;;  %v271_v29 = vld [vmem:[%s1182_s4 + $0x20] sm:$0xff]  ;;  %v45_v32 = vld [vmem:[%s1178_s0 + $0x50] sm:$0xff]  ;;  %s628_s28 = sshll.u32 %s914_s27, 4  ;;  %s629_s28 = int_to_ptr.vmem [resolvable:$true] %s628_s28 }
  0x15   :  { %275 = vperm.xlu0 %884, %v267_v22   ;;  %v831_v28 = vpack.c.bf16 %v44_v26, %v43_v25  ;;  %v272_v30 = vld [vmem:[%s1182_s4 + $0x28] sm:$0xff]  ;;  %v426_v31 = vld [vmem:[%s1184_s6] sm:$0xff]  ;;  %v46_v33 = vld [vmem:[%s1178_s0 + $0x58] sm:$0xff]  ;;  %s886_s29 = scalar_lea.vmem %s629_s28, 16  ;;  %p891_p1 = scmp.lt.s32.totalorder %s629_s28, %s629_s28 }
  0x16   :  { %v427_v34 = vld [vmem:[%s1184_s6 + $0x8] sm:$0xff]  ;;  %v837_v35 = vpack.c.bf16 %v46_v33, %v45_v32  ;;  %v428_v36 = vld [vmem:[%s1184_s6 + $0x10] sm:$0xff]  ;;  %v537_v37 = vld [vmem:[#allocation2] sm:$0x1]  ;;  %p887_p0 = scmp.ne.s32.totalorder %s629_s28, %s886_s29 }
  0x17   :  { %824 = vmatpush3.bf16.xpose.msk.msra.mxu0 %vm979_vm1, %v819_v14  ;;  %280 = vperm.xlu1 %885, %v268_v23   ;;  %v47_v38 = vld [vmem:[%s1178_s0 + $0x60] sm:$0xff]  ;;  %v48_v39 = vld [vmem:[%s1178_s0 + $0x68] sm:$0xff]  ;;  %v49_v41 = vld [vmem:[%s1178_s0 + $0x70] sm:$0xff] }
  0x18   :  { %827 = vmatprep.subr.msk.bf16.mxu0 %vm979_vm1, %v825_v21  ;;  %v843_v40 = vpack.c.bf16 %v48_v39, %v47_v38  ;;  %v50_v42 = vld [vmem:[%s1178_s0 + $0x78] sm:$0xff]  ;;  %v52_v44 = vld [vmem:[%s1179_s1 + $0x8] sm:$0xff]  ;;  %v53_v45 = vld [vmem:[%s1179_s1 + $0x10] sm:$0xff]  ;;  %s890_s0 = scalar_lea.vmem %s629_s28, 32 }
  0x19   :  { %285 = vperm.xlu0 %884, %v269_v24   ;;  %v849_v43 = vpack.c.bf16 %v50_v42, %v49_v41  ;;  %v54_v46 = vld [vmem:[%s1179_s1 + $0x18] sm:$0xff]  ;;  %v55_v47 = vld [vmem:[%s1179_s1 + $0x20] sm:$0xff]  ;;  %v56_v48 = vld [vmem:[%s1179_s1 + $0x28] sm:$0xff]  ;;  %p892_p2 = scmp.lt.s32.totalorder %s890_s0, %s886_s29 }
  0x1a   :  { %v261_v49 = vld [vmem:[%s1181_s3] sm:$0xff]  ;;  %v262_v13 = vld [vmem:[%s1181_s3 + $0x8] sm:$0xff]  ;;  %v263_v14 = vld [vmem:[%s1181_s3 + $0x10] sm:$0xff] }
  0x1b   :  { %290 = vperm.xlu1 %885, %v270_v27   ;;  %768 = vmatprep.mubr.msk.f32.mxu1 %vm303_vm2, %v261_v49  ;;  %v264_v15 = vld [vmem:[%s1181_s3 + $0x18] sm:$0xff]  ;;  %v265_v16 = vld [vmem:[%s1181_s3 + $0x20] sm:$0xff]  ;;  %v266_v17 = vld [vmem:[%s1181_s3 + $0x28] sm:$0xff]  ;;  %p893_p3 = por %p892_p2, %p891_p1 }
  0x1c   :  { %v425_v49 = vld [vmem:[%s1183_s5 + $0x10] sm:$0xff] }
  0x1d   :  { %295 = vperm.xlu0 %884, %v271_v29   ;;  %p894_p4 = pnand %p893_p3, %p887_p0 }
  0x1f   :  { %830 = vmatpush3.bf16.xpose.msk.msra.mxu0 %vm979_vm1, %v825_v21  ;;  %300 = vperm.xlu1 %885, %v272_v30  }
  0x20   :  { %833 = vmatprep.subr.msk.bf16.mxu0 %vm979_vm1, %v831_v28 }
  0x21   :  { %431 = vperm.xlu0 %884, %v426_v31  }
  0x23   :  { %436 = vperm.xlu1 %885, %v427_v34  }
  0x25   :  { %441 = vperm.xlu0 %884, %v428_v36  }
  0x27   :  { %836 = vmatpush3.bf16.xpose.msk.msra.mxu0 %vm979_vm1, %v831_v28  ;;  %540 = vperm.xlu1 %885, %v537_v37  }
  0x28   :  { %839 = vmatprep.subr.msk.bf16.mxu0 %vm979_vm1, %v837_v35 }
  0x2f   :  { %842 = vmatpush3.bf16.xpose.msk.msra.mxu0 %vm979_vm1, %v837_v35 }
  0x30   :  { %845 = vmatprep.subr.msk.bf16.mxu0 %vm979_vm1, %v843_v40 }
  0x37   :  { %848 = vmatpush3.bf16.xpose.msk.msra.mxu0 %vm979_vm1, %v843_v40 }
  0x38   :  { %851 = vmatprep.subr.msk.bf16.mxu0 %vm979_vm1, %v849_v43 }
  0x3f   :  { %854 = vmatpush3.bf16.xpose.msk.msra.mxu0 %vm979_vm1, %v849_v43 }
  0x46   :  { %748 = vmatmul.mubr.msk.f32.vlgmr.msra.gmra.mrb[0].mxu0 %vm93_vm0, %v52_v44 }
  0x47   :  { %750 = vmatprep.mubr.msk.f32.mxu0 %vm93_vm0, %v53_v45 }
  0x4a   :  { %751 = vmatmul.mubr.msk.f32.gmra.mrb[2].mxu0 %vm93_vm0, %v54_v46 }
  0x4b   :  { %753 = vmatprep.mubr.msk.f32.mxu0 %vm93_vm0, %v55_v47  ;;  %v423_v47 = vld [vmem:[%s1183_s5] sm:$0xff] }
  0x4e   :  { %754 = vmatmul.mubr.msk.f32.gmra.mrb[4].mxu0 %vm93_vm0, %v56_v48  ;;  %v424_v48 = vld [vmem:[%s1183_s5 + $0x8] sm:$0xff] }
  0x85   :  { %v76_v51 = vpop.permute.xlu1 %75 }
  0x86   :  { %v66_v50 = vpop.permute.xlu0 %65 }
  0x89   :  { %v81_v56 = vpop.permute.xlu1 %80 }
  0x8a   :  { %v71_v52 = vpop.permute.xlu0 %70 }
  0x90   :  { %v86_v5 = vpop.permute.xlu0 %85 }
  0x92   :  { %v91_v2 = vpop.permute.xlu1 %90 }
  0x94   :  { %v276_v21 = vpop.permute.xlu0 %275 }
  0x96   :  { %v281_v20 = vpop.permute.xlu1 %280 }
  0x98   :  { %v286_v27 = vpop.permute.xlu0 %285 }
  0x9a   :  { %v291_v25 = vpop.permute.xlu1 %290 }
  0x9c   :  { %v296_v39 = vpop.permute.xlu0 %295 }
  0x9e   :  { %v301_v36 = vpop.permute.xlu1 %300 }
 0x119   :  { %v749_v53 = vpop.f32.mrb[0].mxu0 }
 0x11a   :  { %v232_v54 = vadd.f32 %v749_v53, %v71_v52  ;;  %v226_v55 = vpop.f32.mrb[1].mxu0  ;;  %v432_v52 = vpop.permute.xlu0 %431 }
 0x11b   :  { %v227_v57 = vadd.f32 %v226_v55, %v66_v50 }
 0x11c   :  { %v256_v58 = vmax.f32 %v232_v54, 0.0  ;;  %v437_v54 = vpop.permute.xlu1 %436 }
 0x11d   :  { %v255_v59 = vmax.f32 %v227_v57, 0.0  ;;  %v752_v60 = vpop.f32.mrb[2].mxu0 }
 0x11e   :  { %v242_v61 = vadd.f32 %v752_v60, %v81_v56  ;;  %v236_v62 = vpop.f32.mrb[3].mxu0  ;;  %v442_v60 = vpop.permute.xlu0 %441 }
 0x11f   :  { %v237_v63 = vadd.f32 %v236_v62, %v76_v51  ;;  %v855_v0 = vpack.c.bf16 %v256_v58, %v255_v59 }
 0x120   :  { %v258_v1 = vmax.f32 %v242_v61, 0.0 }
 0x121   :  { %v257_v3 = vmax.f32 %v237_v63, 0.0  ;;  %v755_v4 = vpop.f32.mrb[4].mxu0  ;;  %856 = vmatprep.subr.bf16.mxu1 %v855_v0 }
 0x122   :  { %v252_v6 = vadd.f32 %v755_v4, %v91_v2  ;;  %v246_v7 = vpop.f32.mrb[5].mxu0  ;;  %858 = vmatpush3.bf16.msra.mxu1 %v855_v0  ;;  %v536_v2 = vld [vmem:[%s1185_s7] sm:$0x1] }
 0x123   :  { %v859_v8 = vpack.c.bf16 %v258_v1, %v257_v3  ;;  %v247_v9 = vadd.f32 %v246_v7, %v86_v5  ;;  %v543_v3 = vlaneseq }
 0x124   :  { %v260_v10 = vmax.f32 %v252_v6, 0.0  ;;  %v541_v6 = vpop.permute.xlu1 %540 }
 0x125   :  { %v259_v11 = vmax.f32 %v247_v9, 0.0  ;;  %860 = vmatprep.subr.bf16.mxu1 %v859_v8  ;;  %v544_v4 = vshrl.u32 %v543_v3, 7 }
 0x126   :  { %862 = vmatpush3.bf16.msra.mxu1 %v859_v8 }
 0x127   :  { %v863_v12 = vpack.c.bf16 %v260_v10, %v259_v11  ;;  %v545_v5 = vsub.s32 0, %v544_v4 }
 0x129   :  { %864 = vmatprep.subr.bf16.mxu1 %v863_v12  ;;  %v546_v7 = vrot.slane %v541_v6, %v545_v5 }
 0x12a   :  { %866 = vmatpush3.bf16.msra.mxu1 %v863_v12 }
 0x12b   :  { %867 = vmatprep.subr.bf16.mxu1 %v911_v18 }
 0x12d   :  { %769 = vmatmul.mubr.msk.f32.vlgmr.msra.gmra.mrb[0].mxu1 %vm303_vm2, %v262_v13 }
 0x12e   :  { %771 = vmatprep.mubr.msk.f32.mxu1 %vm303_vm2, %v263_v14 }
 0x131   :  { %772 = vmatmul.mubr.msk.f32.gmra.mrb[2].mxu1 %vm303_vm2, %v264_v15 }
 0x132   :  { %774 = vmatprep.mubr.msk.f32.mxu1 %vm303_vm2, %v265_v16 }
 0x135   :  { %775 = vmatmul.mubr.msk.f32.gmra.mrb[4].mxu1 %vm303_vm2, %v266_v17 }
 0x136   :  { %789 = vmatprep.mubr.msk.f32.mxu1 %vm912_vm3, %v913_v19 }
 0x200   :  { %v770_v22 = vpop.f32.mrb[0].mxu1 }
 0x201   :  { %v394_v23 = vadd.f32 %v770_v22, %v281_v20  ;;  %v388_v24 = vpop.f32.mrb[1].mxu1 }
 0x202   :  { %v389_v26 = vadd.f32 %v388_v24, %v276_v21 }
 0x203   :  { %v418_v28 = vmax.f32 %v394_v23, 0.0 }
 0x204   :  { %v417_v29 = vmax.f32 %v389_v26, 0.0  ;;  %v773_v30 = vpop.f32.mrb[2].mxu1 }
 0x205   :  { %v404_v31 = vadd.f32 %v773_v30, %v291_v25  ;;  %v398_v32 = vpop.f32.mrb[3].mxu1 }
 0x206   :  { %v868_v33 = vpack.c.bf16 %v418_v28, %v417_v29  ;;  %v399_v34 = vadd.f32 %v398_v32, %v286_v27 }
 0x207   :  { %v420_v35 = vmax.f32 %v404_v31, 0.0 }
 0x208   :  { %v419_v37 = vmax.f32 %v399_v34, 0.0  ;;  %v776_v38 = vpop.f32.mrb[4].mxu1  ;;  %869 = vmatpush3.bf16.msra.mxu1 %v868_v33 }
 0x209   :  { %v414_v40 = vadd.f32 %v776_v38, %v301_v36  ;;  %v408_v41 = vpop.f32.mrb[5].mxu1  ;;  %870 = vmatprep.subr.bf16.mxu1 %v911_v18 }
 0x20a   :  { %v871_v42 = vpack.c.bf16 %v420_v35, %v419_v37  ;;  %v409_v43 = vadd.f32 %v408_v41, %v296_v39 }
 0x20b   :  { %v422_v44 = vmax.f32 %v414_v40, 0.0 }
 0x20c   :  { %v421_v45 = vmax.f32 %v409_v43, 0.0  ;;  %872 = vmatpush3.bf16.msra.mxu1 %v871_v42 }
 0x20d   :  { %873 = vmatprep.subr.bf16.mxu1 %v911_v18 }
 0x20e   :  { %v874_v46 = vpack.c.bf16 %v422_v44, %v421_v45 }
 0x210   :  { %875 = vmatpush3.bf16.msra.mxu1 %v874_v46 }
 0x211   :  { %876 = vmatprep.subr.bf16.mxu1 %v911_v18 }
 0x213   :  { %790 = vmatmul.mubr.msk.f32.vlgmr.msra.gmra.mrb[6].mxu1 %vm303_vm2, %v423_v47 }
 0x214   :  { %792 = vmatprep.mubr.msk.f32.mxu1 %vm912_vm3, %v913_v19 }
 0x217   :  { %793 = vmatmul.mubr.msk.f32.gmra.mrb[8].mxu1 %vm303_vm2, %v424_v48 }
 0x218   :  { %795 = vmatprep.mubr.msk.f32.mxu1 %vm912_vm3, %v913_v19 }
 0x21b   :  { %796 = vmatmul.mubr.msk.f32.gmra.mrb[10].mxu1 %vm303_vm2, %v425_v49 }
 0x21c   :  { %804 = vmatprep.mubr.msk.f32.mxu1 %vm912_vm3, %v913_v19 }
 0x2e6   :  { %v519_v50 = vpop.f32.mrb[6].mxu1 }
 0x2e7   :  { %v791_v51 = vpop.f32.mrb[7].mxu1  ;;  %v520_v53 = vadd.f32 %v519_v50, %v432_v52 }
 0x2e9   :  { %v533_v58 = vmax.f32 %v520_v53, 0.0 }
 0x2ea   :  { %v524_v55 = vpop.f32.mrb[8].mxu1 }
 0x2eb   :  { %v525_v56 = vadd.f32 %v524_v55, %v437_v54  ;;  %v794_v57 = vpop.f32.mrb[9].mxu1 }
 0x2ed   :  { %v534_v59 = vmax.f32 %v525_v56, 0.0 }
 0x2ee   :  { %v529_v61 = vpop.f32.mrb[10].mxu1 }
 0x2ef   :  { %v877_v62 = vpack.c.bf16 %v534_v59, %v533_v58  ;;  %v530_v63 = vadd.f32 %v529_v61, %v442_v60  ;;  %v797_v0 = vpop.f32.mrb[11].mxu1 }
 0x2f1   :  { %878 = vmatpush3.bf16.msra.mxu1 %v877_v62  ;;  %v535_v1 = vmax.f32 %v530_v63, 0.0 }
 0x2f2   :  { %802 = vmatprep.subr.mxu1 %v913_v19 }
 0x2f5   :  { %803 = vmatpush3.msra.mxu1 %v535_v1 }
 0x2f6   :  { %805 = vmatmul.mubr.msk.f32.vlgmr.msra.gmra.mrb[12].mxu1 %vm547_vm4, %v536_v2 }
 0x3c9   :  { %v617_v8 = vpop.f32.mrb[12].mxu1 }
 0x3ca   :  { %v618_v9 = vadd.f32 %v617_v8, %v546_v7  ;;  %v806_v10 = vpop.f32.mrb[13].mxu1 }
 0x3cc   :  { %621 = vst [vmem:[#allocation3] sm:$0x1] %v618_v9 }
 0x3cd   :  { %897 = shalt.err (!%p894_p4)
}
 0x3ce   :  { %s898_s10 = scalar_lea.hbm %s1187_s9, 16 }
 0x3cf   :  { %p899_p5 = scmp.ne.s32.totalorder %s1187_s9, %s898_s10  ;;  %p902_p6 = scmp.lt.u32.totalorder %s898_s10, %s1187_s9 }
 0x3d1   :  { %p904_p7 = pnand %p902_p6, %p899_p5 }
 0x3d3   :  { %907 = shalt.err (!%p904_p7)
}
 0x3d4   :  { %631 = dma.vmem_to_hbm [thread:$0]  %s629_s28, 16, %s1187_s9, [#allocation4]  }
 0x3d5   :  { %908 = dma.done.wait [#allocation4], 16  }
 0x3d6   :  { %909 = vsyncadd [#allocation4], 4294967280 }
 0x3d7   :  { %635 = vsyncpa [#allocation4], 1 }

</bundles_post_ra>
